<compile_context>
chip_gen: v7x
topology: tpu7x:2x2x1
jax: 0.10.0
libtpu: 0.0.40
codegen_flags: <defaults>
</compile_context>

<pallas_src>
import jax
import jax.numpy as jnp
from jax.experimental import pallas as pl
from jax.experimental.pallas import tpu as pltpu

B = 2                    # batch
C, IH, IW = 1, 16, 16    # NCHW input
D = C * IH * IW          # 256 flattened features (MXU K dim)
HID = 32                 # hidden width of each mnist_net head
N1, N2, N3 = 13, 15, 20  # class counts of the three heads
NCLS = N3                # final output width (net3 defines it: 20)

LANE = 128               # packed lane width (full lane tile -> lane-dense stores)
HEAD_OFF = 32            # per-head compartment width inside the packed slabs
SUB_BF16 = 16            # bf16 sublane tile (rows per vreg)

# Single packed bf16 weight-slab row layout (all static offsets, 16-row aligned):
#   rows [0, 256)    : W1cat  (head k hidden at cols [32k, 32k+32); cols 96:128 zero)
#   row  256         : B1cat  (rows 257:272 zero padding)
#   rows [272, 400)  : W2blk  (block-diagonal; padded class cols exactly zero)
#   row  400         : B2cat  (rows 401:416 zero padding)
B1_ROW = D                      # 256
W2_OFF = D + SUB_BF16           # 272
B2_ROW = W2_OFF + LANE          # 400
SLAB_ROWS = B2_ROW + SUB_BF16   # 416


def trip_kernel(x_ref, w_ref, out_ref):
    x = x_ref[...]                                                  # [BP, D] bf16

    # Static row-slices of the single packed slab (no extra DMAs).
    w1 = w_ref[0:D, :]                                              # [D, 128]  bf16
    b1 = w_ref[B1_ROW:B1_ROW + 1, :].astype(jnp.float32)            # [1, 128]
    w2 = w_ref[W2_OFF:W2_OFF + LANE, :]                             # [128, 128] bf16
    b2 = w_ref[B2_ROW:B2_ROW + 1, :].astype(jnp.float32)            # [1, 128]

    # Fused first layer: one bf16 MXU matmul for all three heads, f32 accumulate.
    h = jnp.maximum(
        jnp.dot(x, w1, preferred_element_type=jnp.float32) + b1, 0.0)  # [BP, 128] f32

    # Fused second layer: block-diagonal -> all three logit heads in one matmul.
    # Head k lives at columns [32k, 32k+n_k); its pad columns are exactly zero,
    # reproducing torch.cat((out, zeros), 1).
    o = jnp.dot(h.astype(jnp.bfloat16), w2,
                preferred_element_type=jnp.float32) + b2               # [BP, 128] f32

    # Lane-rotate so head2 / head3 compartments are aligned at column 0
    # (XLU rotate; MXU/VALU slots unaffected).
    r2 = pltpu.roll(o, shift=LANE - 1 * HEAD_OFF, axis=1)              # head2 -> cols 0:32
    r3 = pltpu.roll(o, shift=LANE - 2 * HEAD_OFF, axis=1)              # head3 -> cols 0:32

    # `pred_k > 9`  <=>  max(logits[10:20]) > max(logits[0:10])  (strict, so a
    # tie keeps the first-occurrence index <= 9, matching torch.max).
    def sel_flag(c):
        lo = jnp.max(c[:, 0:10], axis=1, keepdims=True)
        hi = jnp.max(c[:, 10:20], axis=1, keepdims=True)
        return hi > lo                                                 # [BP, 1] bool

    f1 = sel_flag(o)
    f2 = sel_flag(r2)
    f3 = sel_flag(r3)

    # Reference control flow (per sample):
    #   if pred3 > 9: net3  elif pred2 > 9: net2  elif pred1 > 9: net1
    #   else: (net1 + net2 + net3) / 3
    avg = (o + r2 + r3) * (1.0 / 3.0)
    res = jnp.where(f3, r3, jnp.where(f2, r2, jnp.where(f1, o, avg)))

    # Lane-dense, full-tile (unmasked) store; only rows 0:B / cols 0:20 are
    # meaningful and are sliced out in the wrapper.
    out_ref[...] = res.astype(out_ref.dtype)


def init_mnist_net_params(key, n_out):
    """Deterministic PyTorch-style uniform init for one 2-layer MLP head."""
    k1, k2, k3, k4 = jax.random.split(key, 4)
    lim1 = 1.0 / (D ** 0.5)
    lim2 = 1.0 / (HID ** 0.5)
    w1 = jax.random.uniform(k1, (D, HID), jnp.float32, -lim1, lim1)
    b1 = jax.random.uniform(k2, (HID,), jnp.float32, -lim1, lim1)
    w2 = jax.random.uniform(k3, (HID, n_out), jnp.float32, -lim2, lim2)
    b2 = jax.random.uniform(k4, (n_out,), jnp.float32, -lim2, lim2)
    return w1, b1, w2, b2


def pack_trip_params(params1, params2, params3):
    """Pack the 3 heads (weights + biases) into ONE bf16 slab.

    Called once at parameter-load time (hoisted out of the forward path).
    """
    W = jnp.zeros((SLAB_ROWS, LANE), jnp.float32)
    for k, (w1, b1, w2, b2) in enumerate((params1, params2, params3)):
        off = k * HEAD_OFF
        n = w2.shape[1]
        W = W.at[0:D, off:off + HID].set(w1)
        W = W.at[B1_ROW, off:off + HID].set(b1)
        W = W.at[W2_OFF + off:W2_OFF + off + HID, off:off + n].set(w2)
        W = W.at[B2_ROW, off:off + n].set(b2)
    return W.astype(jnp.bfloat16)                                  # [416, 128] bf16


@jax.jit
def trip_3_5_20_noT_forward(x_nchw, w_slab):
    bsz = x_nchw.shape[0]
    x2d = x_nchw.reshape(bsz, -1)                                  # x.view(B, -1)

    # Pad the batch up to a 16-row sublane tile (bf16 LHS / unmasked f32 store).
    bp = max(SUB_BF16, ((bsz + SUB_BF16 - 1) // SUB_BF16) * SUB_BF16)
    xp = jnp.zeros((bp, D), jnp.bfloat16).at[0:bsz, :].set(x2d.astype(jnp.bfloat16))

    # Whole problem (~115 KB bf16) fits in VMEM: no grid, no software pipeline,
    # exactly two input DMAs (x + packed weight slab) and one output DMA.
    # TODO(synk): for a large deployed batch, grid only over M with >=256-row
    # blocks (multiple of 16), weight index_maps returning (0, 0) so the slab
    # stays VMEM-resident, and dimension_semantics=("parallel",) so v7x uses
    # both TensorCores; budget block sizes against v7x's 64 MiB VMEM.
    vmem = pl.BlockSpec(memory_space=pltpu.MemorySpace.VMEM)
    out_padded = pl.pallas_call(
        trip_kernel,
        out_shape=jax.ShapeDtypeStruct((bp, LANE), jnp.float32),
        in_specs=[vmem, vmem],
        out_specs=vmem,
    )(xp, w_slab)
    return out_padded[0:bsz, 0:NCLS]                               # [B, 20]


if __name__ == "__main__":
    key = jax.random.PRNGKey(0)
    kx, k1, k2, k3 = jax.random.split(key, 4)

    x = jax.random.normal(kx, (B, C, IH, IW), jnp.float32)         # NCHW input
    params1 = init_mnist_net_params(k1, N1)   # trip13_0_noT  -> mnist_net(13)
    params2 = init_mnist_net_params(k2, N2)   # trip15_15_noT -> mnist_net(15)
    params3 = init_mnist_net_params(k3, N3)   # trip20_25_noT -> mnist_net(20)

    # Pre-pack ONCE (parameter-load time), not per forward call.
    w_slab = jax.block_until_ready(pack_trip_params(params1, params2, params3))

    out = trip_3_5_20_noT_forward(x, w_slab)
    jax.block_until_ready(out)
    assert out.shape == (B, NCLS) and out.dtype == jnp.float32
    print("KERNEL_OK")
</pallas_src>

<mosaic_0001>
module attributes {stable_mosaic.version = 11 : i64} {
  func.func @trip_kernel(%arg0: memref<16x256xbf16, #tpu.memory_space<vmem>>, %arg1: memref<416x128xbf16, #tpu.memory_space<vmem>>, %arg2: memref<16x128xf32, #tpu.memory_space<vmem>>) attributes {dimension_semantics = [], scalar_prefetch = 0 : i64, scratch_operands = 0 : i64, tpu.core_type = #tpu.core_type<tc>} {
    %c0 = arith.constant 0 : index
    %c0_0 = arith.constant 0 : index
    %0 = vector.load %arg0[%c0, %c0_0] : memref<16x256xbf16, #tpu.memory_space<vmem>>, vector<16x256xbf16>
    %c0_1 = arith.constant 0 : index
    %c0_2 = arith.constant 0 : index
    %1 = vector.load %arg1[%c0_1, %c0_2] : memref<416x128xbf16, #tpu.memory_space<vmem>>, vector<256x128xbf16>
    %c256 = arith.constant 256 : index
    %c0_3 = arith.constant 0 : index
    %2 = vector.load %arg1[%c256, %c0_3] : memref<416x128xbf16, #tpu.memory_space<vmem>>, vector<1x128xbf16>
    %3 = arith.extf %2 : vector<1x128xbf16> to vector<1x128xf32>
    %c272 = arith.constant 272 : index
    %c0_4 = arith.constant 0 : index
    %4 = vector.load %arg1[%c272, %c0_4] : memref<416x128xbf16, #tpu.memory_space<vmem>>, vector<128x128xbf16>
    %c400 = arith.constant 400 : index
    %c0_5 = arith.constant 0 : index
    %5 = vector.load %arg1[%c400, %c0_5] : memref<416x128xbf16, #tpu.memory_space<vmem>>, vector<1x128xbf16>
    %6 = arith.extf %5 : vector<1x128xbf16> to vector<1x128xf32>
    %cst = arith.constant dense<0.000000e+00> : vector<16x128xf32>
    %7 = tpu.matmul %0, %1, %cst {dimension_numbers = #tpu.dot_dimension_numbers<[1], [0], [0], [1], [0, 0, 1, 1], [], []>} : vector<16x256xbf16>, vector<256x128xbf16>, vector<16x128xf32> -> vector<16x128xf32>
    %8 = vector.broadcast %3 : vector<1x128xf32> to vector<16x128xf32>
    %9 = arith.addf %7, %8 : vector<16x128xf32>
    %cst_6 = arith.constant 0.000000e+00 : f32
    %10 = vector.broadcast %cst_6 : f32 to vector<16x128xf32>
    %11 = arith.maximumf %9, %10 : vector<16x128xf32>
    %12 = arith.truncf %11 : vector<16x128xf32> to vector<16x128xbf16>
    %cst_7 = arith.constant dense<0.000000e+00> : vector<16x128xf32>
    %13 = tpu.matmul %12, %4, %cst_7 {dimension_numbers = #tpu.dot_dimension_numbers<[1], [0], [0], [1], [0, 0, 1, 1], [], []>} : vector<16x128xbf16>, vector<128x128xbf16>, vector<16x128xf32> -> vector<16x128xf32>
    %14 = vector.broadcast %6 : vector<1x128xf32> to vector<16x128xf32>
    %15 = arith.addf %13, %14 : vector<16x128xf32>
    %c96_i32 = arith.constant 96 : i32
    %16 = tpu.dynamic_rotate %15 by %c96_i32 dim 1 : vector<16x128xf32>, i32 -> vector<16x128xf32>
    %c64_i32 = arith.constant 64 : i32
    %17 = tpu.dynamic_rotate %15 by %c64_i32 dim 1 : vector<16x128xf32>, i32 -> vector<16x128xf32>
    %18 = vector.extract_strided_slice %15 {offsets = [0, 0], sizes = [16, 10], strides = [1, 1]} : vector<16x128xf32> to vector<16x10xf32>
    %cst_8 = arith.constant dense<0xFF800000> : vector<16xf32>
    %19 = vector.multi_reduction <maximumf>, %18, %cst_8 [1] : vector<16x10xf32> to vector<16xf32>
    %20 = vector.shape_cast %19 : vector<16xf32> to vector<16x1xf32>
    %21 = vector.extract_strided_slice %15 {offsets = [0, 10], sizes = [16, 10], strides = [1, 1]} : vector<16x128xf32> to vector<16x10xf32>
    %cst_9 = arith.constant dense<0xFF800000> : vector<16xf32>
    %22 = vector.multi_reduction <maximumf>, %21, %cst_9 [1] : vector<16x10xf32> to vector<16xf32>
    %23 = vector.shape_cast %22 : vector<16xf32> to vector<16x1xf32>
    %24 = arith.cmpf ogt, %23, %20 : vector<16x1xf32>
    %25 = vector.extract_strided_slice %16 {offsets = [0, 0], sizes = [16, 10], strides = [1, 1]} : vector<16x128xf32> to vector<16x10xf32>
    %cst_10 = arith.constant dense<0xFF800000> : vector<16xf32>
    %26 = vector.multi_reduction <maximumf>, %25, %cst_10 [1] : vector<16x10xf32> to vector<16xf32>
    %27 = vector.shape_cast %26 : vector<16xf32> to vector<16x1xf32>
    %28 = vector.extract_strided_slice %16 {offsets = [0, 10], sizes = [16, 10], strides = [1, 1]} : vector<16x128xf32> to vector<16x10xf32>
    %cst_11 = arith.constant dense<0xFF800000> : vector<16xf32>
    %29 = vector.multi_reduction <maximumf>, %28, %cst_11 [1] : vector<16x10xf32> to vector<16xf32>
    %30 = vector.shape_cast %29 : vector<16xf32> to vector<16x1xf32>
    %31 = arith.cmpf ogt, %30, %27 : vector<16x1xf32>
    %32 = vector.extract_strided_slice %17 {offsets = [0, 0], sizes = [16, 10], strides = [1, 1]} : vector<16x128xf32> to vector<16x10xf32>
    %cst_12 = arith.constant dense<0xFF800000> : vector<16xf32>
    %33 = vector.multi_reduction <maximumf>, %32, %cst_12 [1] : vector<16x10xf32> to vector<16xf32>
    %34 = vector.shape_cast %33 : vector<16xf32> to vector<16x1xf32>
    %35 = vector.extract_strided_slice %17 {offsets = [0, 10], sizes = [16, 10], strides = [1, 1]} : vector<16x128xf32> to vector<16x10xf32>
    %cst_13 = arith.constant dense<0xFF800000> : vector<16xf32>
    %36 = vector.multi_reduction <maximumf>, %35, %cst_13 [1] : vector<16x10xf32> to vector<16xf32>
    %37 = vector.shape_cast %36 : vector<16xf32> to vector<16x1xf32>
    %38 = arith.cmpf ogt, %37, %34 : vector<16x1xf32>
    %39 = arith.addf %15, %16 : vector<16x128xf32>
    %40 = arith.addf %39, %17 : vector<16x128xf32>
    %cst_14 = arith.constant 0.333333343 : f32
    %41 = vector.broadcast %cst_14 : f32 to vector<16x128xf32>
    %42 = arith.mulf %40, %41 : vector<16x128xf32>
    %43 = vector.shape_cast %24 : vector<16x1xi1> to vector<16x1xi1>
    %44 = vector.broadcast %43 : vector<16x1xi1> to vector<16x128xi1>
    %45 = arith.select %44, %15, %42 : vector<16x128xi1>, vector<16x128xf32>
    %46 = vector.shape_cast %31 : vector<16x1xi1> to vector<16x1xi1>
    %47 = vector.broadcast %46 : vector<16x1xi1> to vector<16x128xi1>
    %48 = arith.select %47, %16, %45 : vector<16x128xi1>, vector<16x128xf32>
    %49 = vector.shape_cast %38 : vector<16x1xi1> to vector<16x1xi1>
    %50 = vector.broadcast %49 : vector<16x1xi1> to vector<16x128xi1>
    %51 = arith.select %50, %17, %48 : vector<16x128xi1>, vector<16x128xf32>
    %c0_15 = arith.constant 0 : index
    %c0_16 = arith.constant 0 : index
    %52 = vector.load %arg2[%c0_15, %c0_16] : memref<16x128xf32, #tpu.memory_space<vmem>>, vector<16x128xf32>
    tpu.vector_store %arg2[%c0_15, %c0_16], %51 {strides = array<i32>} : memref<16x128xf32, #tpu.memory_space<vmem>>, vector<16x128xf32>,
    return
  }
}

</mosaic_0001>

<bundles_post_ra>
// kernel: trip_3_5_20_noT_forward.1
= control target key start
LH: loop header
LB: loop body
LE: loop exit
PB: predicated region body
PF: predicated region fallthrough
CT: control target
= control target key end

     0   :  { %7 = vsyncpa [#allocation3], 0  ;;  %s544_s9 = smov [#allocation2]   ;;  %s613_s0 = inlined_call_operand.vmem [shape: bf16[16,256], index: 0, kind: input, shape index: {}]   ;;  %s614_s1 = inlined_call_operand.hbm [shape: bf16[416,128], index: 1, kind: input, shape index: {}]   ;;  %s615_s2 = inlined_call_operand.vmem [shape: f32[16,128], index: 2, kind: output, shape index: {}]  }
   0x1   :  { %s15_s10 = sshll.u32 %s544_s9, 4  ;;  %s520_s13 = scalar_lea.hbm %s614_s1, 3328  ;;  %s16_s10 = int_to_ptr.vmem [resolvable:$true] %s15_s10 }
   0x2   :  { %p521_p0 = scmp.ne.s32.totalorder %s614_s1, %s520_s13  ;;  %p524_p1 = scmp.lt.u32.totalorder %s520_s13, %s614_s1 }
   0x4   :  { %p526_p2 = pnand %p524_p1, %p521_p0 }
   0x6   :  { %529 = shalt.err (!%p526_p2)
}
   0x7   :  { %s530_s18 = scalar_lea.vmem %s16_s10, 3328  ;;  %p535_p4 = scmp.lt.s32.totalorder %s16_s10, %s16_s10 }
   0x8   :  { %p531_p3 = scmp.ne.s32.totalorder %s16_s10, %s530_s18  ;;  %p536_p5 = scmp.lt.s32.totalorder %s530_s18, %s530_s18 }
   0xa   :  { %p537_p6 = por %p536_p5, %p535_p4 }
   0xc   :  { %p538_p7 = pnand %p537_p6, %p531_p3 }
   0xe   :  { %541 = shalt.err (!%p538_p7)
}
   0xf   :  { %s545_s19 = smov 64   ;;  %s546_s20 = smov 4  }
  0x10   :  { %21 = dma.hbm_to_vmem [thread:$0]  %s614_s1, 3328, %s16_s10, [#allocation3], %s545_s19, %s545_s19, %s546_s20  }
  0x11   :  { %542 = dma.done.wait [#allocation3], 3328  }
  0x12   :  { %543 = vsyncadd [#allocation3], 4294963968  ;;  %v547_v0 = vmov 0.0   ;;  %v493_v1 = vld [vmem:[#allocation2 + $0x40] sm:$0xff]   ;;  %v495_v3 = vld [vmem:[#allocation2 + $0x48] sm:$0xff]   ;;  %vm548_vm0 = vmmov 0   ;;  %v80_v27 = vlaneseq }
  0x13   :  { %467 = vmatprep.subr.bf16.mxu1 %v547_v0  ;;  %v494_v2 = vld [vmem:[#allocation2] sm:$0xff]   ;;  %436 = vmatprep.subr.bf16.mxu0 %v493_v1  ;;  %v496_v4 = vld [vmem:[#allocation2 + $0x8] sm:$0xff]   ;;  %v497_v5 = vld [vmem:[#allocation2 + $0x50] sm:$0xff]   ;;  %vm335_vm1 = vcmask 80896   ;;  %vm342_vm2 = vcmask 162896  }
  0x14   :  { %437 = vmatpush3.bf16.msra.mxu0 %v494_v2  ;;  %v498_v6 = vld [vmem:[#allocation2 + $0x10] sm:$0xff]   ;;  %v499_v7 = vld [vmem:[#allocation2 + $0x58] sm:$0xff]   ;;  %v501_v9 = vld [vmem:[#allocation2 + $0x60] sm:$0xff]   ;;  %483 = vmatprep.mubr.msk.bf16.mxu1 %vm548_vm0, %v547_v0  ;;  %v81_v28 = vshrl.u32 %v80_v27, 7 }
  0x15   :  { %438 = vmatprep.subr.bf16.mxu0 %v495_v3  ;;  %v500_v8 = vld [vmem:[#allocation2 + $0x18] sm:$0xff]   ;;  %v502_v10 = vld [vmem:[#allocation2 + $0x20] sm:$0xff]   ;;  %v503_v11 = vld [vmem:[#allocation2 + $0x68] sm:$0xff]  }
  0x16   :  { %v504_v12 = vld [vmem:[#allocation2 + $0x28] sm:$0xff]   ;;  %v505_v15 = vld [vmem:[#allocation2 + $0x70] sm:$0xff]   ;;  %v507_v18 = vld [vmem:[#allocation2 + $0x78] sm:$0xff]   ;;  %v82_v31 = vsub.s32 0, %v81_v28 }
  0x17   :  { %v511_v13 = vld [vmem:[%s613_s0 + $0x4] ss:$8 sps:$4 sm:$0xff]   ;;  %v513_v16 = vld [vmem:[#allocation2 + $0x90] sm:$0xff]   ;;  %v514_v19 = vld [vmem:[#allocation2 + $0x98] sm:$0xff]  }
  0x18   :  { %439 = vmatpush3.bf16.msra.mxu0 %v496_v4  ;;  %v512_v14 = vld [vmem:[#allocation2 + $0x88] sm:$0xff]   ;;  %222 = vmatprep.mubr.bf16.mxu0 %v511_v13  ;;  %v506_v17 = vld [vmem:[#allocation2 + $0x30] sm:$0xff]   ;;  %v508_v20 = vld [vmem:[#allocation2 + $0x38] sm:$0xff]  }
  0x19   :  { %440 = vmatprep.subr.bf16.mxu0 %v497_v5  ;;  %468 = vmatpush3.bf16.msra.mxu1 %v512_v14  ;;  %v515_v21 = vld [vmem:[#allocation2 + $0xa0] sm:$0xff]   ;;  %v516_v23 = vld [vmem:[#allocation2 + $0xa8] sm:$0xff]   ;;  %v517_v24 = vld [vmem:[#allocation2 + $0xb0] sm:$0xff]  }
  0x1a   :  { %469 = vmatprep.subr.bf16.mxu1 %v547_v0  ;;  %v509_v22 = vld [vmem:[%s613_s0] ss:$8 sps:$4 sm:$0xff]   ;;  %v518_v25 = vld [vmem:[#allocation2 + $0xb8] sm:$0xff]   ;;  %s549_s0 = smov 96  }
  0x1b   :  { %v519_v26 = vld [vmem:[#allocation2 + $0xc0] sm:$0xff]   ;;  %v78_v44 = vld [vmem:[#allocation2 + $0xc8] sm:$0x1] }
  0x1c   :  { %441 = vmatpush3.bf16.msra.mxu0 %v498_v6  ;;  %v60_v29 = vld [vmem:[#allocation2 + $0x80] sm:$0x1]  ;;  %v79_v45 = vunpack.c.l.bf16 %v78_v44 }
  0x1d   :  { %442 = vmatprep.subr.bf16.mxu0 %v499_v7  ;;  %470 = vmatpush3.bf16.msra.mxu1 %v513_v16  ;;  %v61_v30 = vunpack.c.l.bf16 %v60_v29 }
  0x1e   :  { %471 = vmatprep.subr.bf16.mxu1 %v547_v0  ;;  %v237_v46 = vrot.slane %v79_v45, %v82_v31 }
  0x1f   :  { %v83_v33 = vrot.slane %v61_v30, %v82_v31 }
  0x20   :  { %443 = vmatpush3.bf16.msra.mxu0 %v500_v8 }
  0x21   :  { %444 = vmatprep.subr.bf16.mxu0 %v501_v9  ;;  %472 = vmatpush3.bf16.msra.mxu1 %v514_v19 }
  0x22   :  { %473 = vmatprep.subr.bf16.mxu1 %v547_v0 }
  0x24   :  { %445 = vmatpush3.bf16.msra.mxu0 %v502_v10 }
  0x25   :  { %446 = vmatprep.subr.bf16.mxu0 %v503_v11  ;;  %474 = vmatpush3.bf16.msra.mxu1 %v515_v21 }
  0x26   :  { %475 = vmatprep.subr.bf16.mxu1 %v547_v0 }
  0x28   :  { %447 = vmatpush3.bf16.msra.mxu0 %v504_v12 }
  0x29   :  { %448 = vmatprep.subr.bf16.mxu0 %v505_v15  ;;  %476 = vmatpush3.bf16.msra.mxu1 %v516_v23 }
  0x2a   :  { %477 = vmatprep.subr.bf16.mxu1 %v547_v0 }
  0x2c   :  { %449 = vmatpush3.bf16.msra.mxu0 %v506_v17 }
  0x2d   :  { %450 = vmatprep.subr.bf16.mxu0 %v507_v18  ;;  %478 = vmatpush3.bf16.msra.mxu1 %v517_v24 }
  0x2e   :  { %479 = vmatprep.subr.bf16.mxu1 %v547_v0 }
  0x30   :  { %451 = vmatpush3.bf16.msra.mxu0 %v508_v20 }
  0x31   :  { %480 = vmatpush3.bf16.msra.mxu1 %v518_v25 }
  0x32   :  { %481 = vmatprep.subr.bf16.mxu1 %v547_v0 }
  0x33   :  { %223 = vmatmul.mubr.bf16.vlgmr.msra.gmra.mrb[0].mxu0 %v509_v22 }
  0x35   :  { %482 = vmatpush3.bf16.msra.mxu1 %v519_v26 }
 0x106   :  { %v452_v32 = vpop.f32.mrb[0].mxu0 }
 0x107   :  { %v453_v34 = vpop.f32.mrb[1].mxu0 }
 0x108   :  { %v454_v35 = vadd.f32 %v453_v34, %v452_v32  ;;  %v455_v36 = vpop.f32.mrb[2].mxu0 }
 0x109   :  { %v456_v37 = vpop.f32.mrb[3].mxu0 }
 0x10a   :  { %v225_v38 = vadd.f32 %v454_v35, %v83_v33  ;;  %v457_v39 = vadd.f32 %v456_v37, %v455_v36 }
 0x10c   :  { %v228_v40 = vadd.f32 %v457_v39, %v83_v33  ;;  %v231_v41 = vmax.f32 %v225_v38, 0.0 }
 0x10e   :  { %v232_v42 = vmax.f32 %v228_v40, 0.0 }
 0x110   :  { %v233_v43 = vpack.c.bf16 %v232_v42, %v231_v41 }
 0x112   :  { %484 = vmatmul.mubr.bf16.vlgmr.msra.gmra.mrb[0].mxu1 %v233_v43 }
 0x1e5   :  { %v320_v47 = vpop.f32.mrb[0].mxu1 }
 0x1e6   :  { %v321_v48 = vadd.f32 %v320_v47, %v237_v46  ;;  %v485_v49 = vpop.f32.mrb[1].mxu1 }
 0x1e7   :  { %v323_v50 = vpop.f32.mrb[2].mxu1 }
 0x1e8   :  { %v585_v51 = vadd.f32 %v323_v50, %v237_v46  ;;  %331 = vrot.lane.b32.xlu1 %v321_v48, %s545_s19  ;;  %327 = vrot.lane.b32.xlu0 %v321_v48, %s549_s0  ;;  %v486_v52 = vpop.f32.mrb[3].mxu1  ;;  %v336_v53 = vsel %vm335_vm1, %v321_v48, -inf  ;;  %v343_v54 = vsel %vm342_vm2, %v321_v48, -inf }
 0x1ea   :  { %v339_v55 = vsel %vm335_vm1, %v585_v51, -inf  ;;  %v346_v56 = vsel %vm342_vm2, %v585_v51, -inf }
 0x1ec   :  { %333 = vrot.lane.b32.xlu1 %v585_v51, %s545_s19  ;;  %329 = vrot.lane.b32.xlu0 %v585_v51, %s549_s0 }
 0x20b   :  { %337 = vmax.xlane.f32.xlu0 %v336_v53 }
 0x20f   :  { %344 = vmax.xlane.f32.xlu0 %v343_v54 }
 0x210   :  { %340 = vmax.xlane.f32.xlu1 %v339_v55 }
 0x213   :  { %347 = vmax.xlane.f32.xlu0 %v346_v56 }
 0x25a   :  { %v328_v57 = vpop.permute.xlu0 %327  ;;  %v332_v59 = vpop.permute.xlu1 %331 }
 0x25b   :  { %v351_v58 = vsel %vm335_vm1, %v328_v57, -inf  ;;  %v357_v62 = vsel %vm342_vm2, %v328_v57, -inf  ;;  %v365_v0 = vsel %vm335_vm1, %v332_v59, -inf  ;;  %v371_v3 = vsel %vm342_vm2, %v332_v59, -inf }
 0x25c   :  { %352 = vmax.xlane.f32.xlu1 %v351_v58  ;;  %v379_v10 = vadd.f32 %v328_v57, %v321_v48 }
 0x25e   :  { %v330_v60 = vpop.permute.xlu0 %329  ;;  %v334_v1 = vpop.permute.xlu1 %333  ;;  %v381_v14 = vadd.f32 %v379_v10, %v332_v59 }
 0x25f   :  { %v354_v61 = vsel %vm335_vm1, %v330_v60, -inf  ;;  %v360_v63 = vsel %vm342_vm2, %v330_v60, -inf  ;;  %v368_v2 = vsel %vm335_vm1, %v334_v1, -inf  ;;  %v374_v4 = vsel %vm342_vm2, %v334_v1, -inf }
 0x260   :  { %355 = vmax.xlane.f32.xlu0 %v354_v61  ;;  %358 = vmax.xlane.f32.xlu1 %v357_v62  ;;  %v380_v13 = vadd.f32 %v330_v60, %v585_v51  ;;  %v383_v17 = vmul.f32 0.33333334, %v381_v14 }
 0x262   :  { %v382_v18 = vadd.f32 %v380_v13, %v334_v1 }
 0x264   :  { %361 = vmax.xlane.f32.xlu0 %v360_v63  ;;  %366 = vmax.xlane.f32.xlu1 %v365_v0  ;;  %v384_v23 = vmul.f32 0.33333334, %v382_v18 }
 0x268   :  { %369 = vmax.xlane.f32.xlu0 %v368_v2  ;;  %372 = vmax.xlane.f32.xlu1 %v371_v3 }
 0x26c   :  { %375 = vmax.xlane.f32.xlu0 %v374_v4 }
 0x298   :  { %v338_v5 = vpop.xlane.xlu0 %337 }
 0x29c   :  { %v345_v6 = vpop.xlane.xlu0 %344 }
 0x29d   :  { %v341_v7 = vpop.xlane.xlu1 %340  ;;  %vm349_vm3 = vcmp.gt.f32.partialorder %v345_v6, %v338_v5 }
 0x29e   :  { %v389_v19 = vsel %vm349_vm3, %v321_v48, %v383_v17 }
 0x2a0   :  { %v348_v8 = vpop.xlane.xlu0 %347 }
 0x2a1   :  { %vm350_vm5 = vcmp.gt.f32.partialorder %v348_v8, %v341_v7 }
 0x2a2   :  { %v390_v25 = vsel %vm350_vm5, %v585_v51, %v384_v23 }
 0x2e9   :  { %v353_v9 = vpop.xlane.xlu1 %352 }
 0x2ed   :  { %v356_v11 = vpop.xlane.xlu0 %355  ;;  %v359_v12 = vpop.xlane.xlu1 %358 }
 0x2ee   :  { %vm363_vm4 = vcmp.gt.f32.partialorder %v359_v12, %v353_v9 }
 0x2ef   :  { %v395_v22 = vsel %vm363_vm4, %v328_v57, %v389_v19 }
 0x2f1   :  { %v362_v15 = vpop.xlane.xlu0 %361  ;;  %v367_v16 = vpop.xlane.xlu1 %366 }
 0x2f2   :  { %vm364_vm7 = vcmp.gt.f32.partialorder %v362_v15, %v356_v11 }
 0x2f3   :  { %v396_v27 = vsel %vm364_vm7, %v330_v60, %v390_v25 }
 0x2f5   :  { %v370_v20 = vpop.xlane.xlu0 %369  ;;  %v373_v21 = vpop.xlane.xlu1 %372 }
 0x2f6   :  { %vm377_vm6 = vcmp.gt.f32.partialorder %v373_v21, %v367_v16 }
 0x2f7   :  { %v401_v24 = vsel %vm377_vm6, %v332_v59, %v395_v22 }
 0x2f8   :  { %403 = vst [vmem:[%s615_s2] sm:$0xff] %v401_v24 }
 0x2f9   :  { %v376_v26 = vpop.xlane.xlu0 %375 }
 0x2fa   :  { %vm378_vm8 = vcmp.gt.f32.partialorder %v376_v26, %v370_v20 }
 0x2fb   :  { %v402_v28 = vsel %vm378_vm8, %v334_v1, %v396_v27 }
 0x2fc   :  { %404 = vst [vmem:[%s615_s2 + $0x8] sm:$0xff] %v402_v28 }
 0x2fd   :  { %409 = vsyncpa [#allocation3], 1 }

</bundles_post_ra>
